<compile_context>
chip_gen: v5e
topology: v5e:2x2
jax: 0.10.0
libtpu: 0.0.40
codegen_flags: <defaults>
</compile_context>

<pallas_src>
import numpy as np

import jax
import jax.numpy as jnp
from jax.experimental import pallas as pl
from jax.experimental.pallas import tpu as pltpu


def _round_up(x, m):
    return (x + m - 1) // m * m


def _gemm_bn_relu_kernel(a_ref, w_ref, bias_ref, o_ref, acc_ref):
    # a_ref:    (TILE_M, TILE_K)     bf16  im2col patch tile
    # w_ref:    (TILE_K, TILE_COUT)  bf16  DoW weight tile (BN scale folded in)
    # bias_ref: (1, TILE_COUT)       f32   folded BatchNorm bias
    # o_ref:    (TILE_M, TILE_COUT)        lane-dense output tile
    # acc_ref:  (TILE_M, TILE_COUT)  f32   VMEM accumulator (K reduction)
    k = pl.program_id(2)

    @pl.when(k == 0)
    def _():
        acc_ref[...] = jnp.zeros_like(acc_ref)

    acc_ref[...] += jnp.dot(a_ref[...], w_ref[...],
                            preferred_element_type=jnp.float32)

    @pl.when(k == pl.num_programs(2) - 1)
    def _():
        y = acc_ref[...] + bias_ref[...]                       # folded BatchNorm
        o_ref[...] = jnp.maximum(y, 0.0).astype(o_ref.dtype)   # ReLU


def _chip_params():
    """Chip-aware VMEM budget + v5e detection (safe fallbacks everywhere)."""
    try:
        kind = jax.devices()[0].device_kind.lower()
    except Exception:
        kind = ""
    try:
        vmem_cap = int(pltpu.get_tpu_info().vmem_capacity_bytes)
    except Exception:
        vmem_cap = (64 if "7" in kind else 128) * 1024 * 1024
    is_v5 = "v5" in kind
    small_vmem = vmem_cap <= 64 * 1024 * 1024          # v7x: 64 MiB per TC
    vmem_budget = (44 if small_vmem else 88) * 1024 * 1024
    return is_v5, vmem_budget


def _select_tiles(M, K, Cp, out_itemsize, is_v5, vmem_budget):
    # Cout tile: keep the whole (scaled) weight VMEM-resident when small,
    # otherwise an MXU-width lane-dense tile (128 on v5e, 256 on v6e/v7x).
    if K * Cp * 2 <= 6 * 1024 * 1024:
        tile_cout = Cp
    elif (not is_v5) and Cp % 256 == 0:
        tile_cout = 256
    else:
        tile_cout = 128

    def step_bytes(tm, tk, tc):
        lhs = 2 * tm * tk * 2              # double-buffered bf16 patch tile
        rhs = 2 * tk * tc * 2              # double-buffered bf16 weight tile
        out = 2 * tm * tc * out_itemsize   # double-buffered output tile
        acc = tm * tc * 4                  # f32 accumulator scratch
        return lhs + rhs + out + acc + 2 * tc * 4

    # K tile candidates: untiled first, then 128-multiples that divide K exactly
    # (exact division keeps the reduction free of garbage columns).
    k_cands = [K]
    for nk in range(2, min(K, 1024) + 1):
        if K % nk == 0 and (K // nk) % 128 == 0:
            k_cands.append(K // nk)

    m_cap = max(8, _round_up(M, 8))
    tile_m, tile_k = None, None
    for cand in (1024, 512, 256, 128, 64, 32, 16, 8):   # prefer big TILE_M
        tm = min(cand, m_cap)
        for tk in k_cands:                               # prefer untiled K
            if step_bytes(tm, tk, tile_cout) <= vmem_budget:
                tile_m, tile_k = tm, tk
                break
        if tile_m is not None:
            break
    if tile_m is None:                                   # pathological fallback
        tile_m, tile_k = min(128, m_cap), k_cands[-1]

    # v7x megacore guard: avoid a 1x1(xK) grid so both TensorCores get work.
    if pl.cdiv(M, tile_m) * (Cp // tile_cout) < 2 and M > 8:
        tile_m = max(8, _round_up(-(-M // 2), 8))        # ceil(M/2), 8-aligned

    return tile_m, tile_k, tile_cout


def basic_conv2d(x_nchw, dow, gamma, beta, running_mean, running_var, *,
                 stride=1, padding=0, dilation=1, eps=1e-5,
                 out_dtype=jnp.float32):
    """BasicConv2d forward: conv2d(DoW, bias=False) -> BatchNorm2d (eval) -> ReLU."""
    N, Cin, H, W = x_nchw.shape
    Cout, _, KH, KW = dow.shape

    # convbn() padding rule: padding = dilation if dilation > 1 else pad
    pad = dilation if dilation > 1 else padding
    OH = (H + 2 * pad - dilation * (KH - 1) - 1) // stride + 1
    OW = (W + 2 * pad - dilation * (KW - 1) - 1) // stride + 1

    # Fold BatchNorm2d (eval mode) into a per-channel scale (-> weight) and bias.
    inv_std = 1.0 / jnp.sqrt(running_var.astype(jnp.float32) + eps)
    scale = gamma.astype(jnp.float32) * inv_std
    bias = beta.astype(jnp.float32) - running_mean.astype(jnp.float32) * scale

    # NCHW -> NHWC, cast to bf16 BEFORE padding / im2col so the large
    # materialized patch matrix is built in bf16.
    x = jnp.transpose(x_nchw, (0, 2, 3, 1)).astype(jnp.bfloat16)
    x = jnp.pad(x, ((0, 0), (pad, pad), (pad, pad), (0, 0)))

    # im2col: (N, OH, OW, KH*KW, Cin) -> (M, K), K ordered as (kh, kw, cin).
    taps = []
    for kh in range(KH):
        for kw in range(KW):
            h0 = kh * dilation
            w0 = kw * dilation
            taps.append(x[:, h0:h0 + (OH - 1) * stride + 1:stride,
                          w0:w0 + (OW - 1) * stride + 1:stride, :])
    M = N * OH * OW
    K = KH * KW * Cin
    patches = jnp.stack(taps, axis=3).reshape(M, K)            # bf16, no M pad

    # DoW (Cout, Cin, KH, KW) -> (K, Cout), BN scale folded into the columns in
    # f32, then bf16; pad Cout to a lane-dense multiple of 128 (tiny tensors).
    Cp = _round_up(Cout, 128)
    w = jnp.transpose(dow.astype(jnp.float32), (2, 3, 1, 0)).reshape(K, Cout)
    w = (w * scale[None, :]).astype(jnp.bfloat16)
    w = jnp.pad(w, ((0, 0), (0, Cp - Cout)))
    bias = jnp.pad(bias, (0, Cp - Cout)).reshape(1, Cp)

    is_v5, vmem_budget = _chip_params()
    out_itemsize = np.dtype(out_dtype).itemsize
    TILE_M, TILE_K, TILE_COUT = _select_tiles(M, K, Cp, out_itemsize,
                                              is_v5, vmem_budget)

    grid = (pl.cdiv(M, TILE_M), Cp // TILE_COUT, K // TILE_K)

    out = pl.pallas_call(
        _gemm_bn_relu_kernel,
        out_shape=jax.ShapeDtypeStruct((M, Cp), out_dtype),
        grid=grid,
        in_specs=[
            pl.BlockSpec((TILE_M, TILE_K), lambda m, c, k: (m, k)),      # patches
            pl.BlockSpec((TILE_K, TILE_COUT), lambda m, c, k: (k, c)),   # weight
            pl.BlockSpec((1, TILE_COUT), lambda m, c, k: (0, c)),        # BN bias
        ],
        out_specs=pl.BlockSpec((TILE_M, TILE_COUT), lambda m, c, k: (m, c)),
        scratch_shapes=[pltpu.VMEM((TILE_M, TILE_COUT), jnp.float32)],
        compiler_params=pltpu.CompilerParams(
            dimension_semantics=("parallel", "parallel", "arbitrary"),
            vmem_limit_bytes=int(vmem_budget)),
    )(patches, w, bias)

    out = out[:, :Cout].reshape(N, OH, OW, Cout)
    # TODO(synk): keep NHWC (skip this transpose) if the next layer accepts it.
    return jnp.transpose(out, (0, 3, 1, 2))


def _compose_doconv_weight(W, D, Cout, Cin, KH, KW):
    # DOConv2d forward composition: DoW = einsum('ims,ois->oim', D, W)
    #   W: (Cout, Cin, D_mul),  D: (Cin, KH*KW, D_mul)  ->  (Cout, Cin, KH, KW)
    dow = jnp.einsum('ims,ois->oim', D, W)
    return dow.reshape(Cout, Cin, KH, KW)


if __name__ == "__main__":
    # Small deterministic example consistent with BasicConv2d(4, 8, 3, 1, 1, 1)
    N, Cin, H, W_sp = 2, 4, 16, 16
    Cout, KH, KW = 8, 3, 3
    stride, padding, dilation = 1, 1, 1
    D_mul = KH * KW

    key = jax.random.PRNGKey(0)
    kx, kw_, kd, kg, kb, km, kv = jax.random.split(key, 7)

    x = jax.random.normal(kx, (N, Cin, H, W_sp), dtype=jnp.float32)

    # DOConv2d parameters (deterministic synthetic init)
    W_param = jax.random.normal(kw_, (Cout, Cin, D_mul), dtype=jnp.float32) * 0.1
    D_param = jax.random.normal(kd, (Cin, KH * KW, D_mul), dtype=jnp.float32) * 0.1
    dow = _compose_doconv_weight(W_param, D_param, Cout, Cin, KH, KW)

    # BatchNorm2d parameters / running stats (deterministic synthetic init)
    gamma = 1.0 + 0.1 * jax.random.normal(kg, (Cout,), dtype=jnp.float32)
    beta = 0.1 * jax.random.normal(kb, (Cout,), dtype=jnp.float32)
    running_mean = 0.1 * jax.random.normal(km, (Cout,), dtype=jnp.float32)
    running_var = jnp.abs(1.0 + 0.1 * jax.random.normal(kv, (Cout,), dtype=jnp.float32))

    out = basic_conv2d(x, dow, gamma, beta, running_mean, running_var,
                       stride=stride, padding=padding, dilation=dilation)
    out = jax.block_until_ready(out)

    # Reference in plain JAX: same bf16-rounded operands (BN scale folded into
    # the weight before rounding, exactly as in the kernel), f32 accumulation.
    pad = dilation if dilation > 1 else padding
    inv_std = 1.0 / jnp.sqrt(running_var + 1e-5)
    scale_ref = gamma * inv_std
    bias_ref = beta - running_mean * scale_ref
    x_bf = jnp.transpose(x, (0, 2, 3, 1)).astype(jnp.bfloat16).astype(jnp.float32)
    w_hwio = jnp.transpose(dow, (2, 3, 1, 0)) * scale_ref
    w_bf = w_hwio.astype(jnp.bfloat16).astype(jnp.float32)
    ref = jax.lax.conv_general_dilated(
        x_bf, w_bf, window_strides=(stride, stride),
        padding=[(pad, pad), (pad, pad)],
        rhs_dilation=(dilation, dilation),
        dimension_numbers=("NHWC", "HWIO", "NHWC"),
        precision=jax.lax.Precision.HIGHEST)
    ref = jnp.maximum(ref + bias_ref, 0.0)
    ref = jnp.transpose(ref, (0, 3, 1, 2))

    assert out.shape == ref.shape, (out.shape, ref.shape)
    assert jnp.allclose(out, ref, atol=2e-3, rtol=2e-3), "mismatch vs reference"
    print("KERNEL_OK")
</pallas_src>

<mosaic_0001>
module attributes {stable_mosaic.version = 11 : i64} {
  func.func @_gemm_bn_relu_kernel(%arg0: i32, %arg1: i32, %arg2: i32, %arg3: memref<256x36xbf16, #tpu.memory_space<vmem>>, %arg4: memref<36x128xbf16, #tpu.memory_space<vmem>>, %arg5: memref<1x128xf32, #tpu.memory_space<vmem>>, %arg6: memref<256x128xf32, #tpu.memory_space<vmem>>, %arg7: memref<256x128xf32, #tpu.memory_space<vmem>>) attributes {dimension_semantics = [#tpu.dimension_semantics<parallel>, #tpu.dimension_semantics<parallel>, #tpu.dimension_semantics<arbitrary>], iteration_bounds = array<i64: 2, 1, 1>, scalar_prefetch = 0 : i64, scratch_operands = 1 : i64, tpu.core_type = #tpu.core_type<tc>, window_params = [{transform_indices = @transform_0, window_bounds = array<i64: 256, 36>}, {transform_indices = @transform_1, window_bounds = array<i64: 36, 128>}, {transform_indices = @transform_2, window_bounds = array<i64: 1, 128>}, {transform_indices = @transform_3, window_bounds = array<i64: 256, 128>}]} {
    %c0_i32 = arith.constant 0 : i32
    %0 = arith.cmpi eq, %arg2, %c0_i32 : i32
    %1 = arith.extui %0 : i1 to i32
    %c0_i32_0 = arith.constant 0 : i32
    %2 = arith.cmpi ne, %1, %c0_i32_0 : i32
    scf.if %2 {
      %cst_10 = arith.constant 0.000000e+00 : f32
      %12 = vector.broadcast %cst_10 : f32 to vector<256x128xf32>
      %c0_11 = arith.constant 0 : index
      %c0_12 = arith.constant 0 : index
      %13 = vector.load %arg7[%c0_11, %c0_12] : memref<256x128xf32, #tpu.memory_space<vmem>>, vector<256x128xf32>
      tpu.vector_store %arg7[%c0_11, %c0_12], %12 {strides = array<i32>} : memref<256x128xf32, #tpu.memory_space<vmem>>, vector<256x128xf32>,
    } else {
    }
    %c0 = arith.constant 0 : index
    %c0_1 = arith.constant 0 : index
    %3 = vector.load %arg7[%c0, %c0_1] : memref<256x128xf32, #tpu.memory_space<vmem>>, vector<256x128xf32>
    %c0_2 = arith.constant 0 : index
    %c0_3 = arith.constant 0 : index
    %4 = vector.load %arg3[%c0_2, %c0_3] : memref<256x36xbf16, #tpu.memory_space<vmem>>, vector<256x36xbf16>
    %c0_4 = arith.constant 0 : index
    %c0_5 = arith.constant 0 : index
    %5 = vector.load %arg4[%c0_4, %c0_5] : memref<36x128xbf16, #tpu.memory_space<vmem>>, vector<36x128xbf16>
    %cst = arith.constant dense<0.000000e+00> : vector<256x128xf32>
    %6 = tpu.matmul %4, %5, %cst {dimension_numbers = #tpu.dot_dimension_numbers<[1], [0], [0], [1], [0, 0, 1, 1], [], []>} : vector<256x36xbf16>, vector<36x128xbf16>, vector<256x128xf32> -> vector<256x128xf32>
    %7 = arith.addf %3, %6 : vector<256x128xf32>
    %c0_6 = arith.constant 0 : index
    %c0_7 = arith.constant 0 : index
    %8 = vector.load %arg7[%c0_6, %c0_7] : memref<256x128xf32, #tpu.memory_space<vmem>>, vector<256x128xf32>
    tpu.vector_store %arg7[%c0_6, %c0_7], %7 {strides = array<i32>} : memref<256x128xf32, #tpu.memory_space<vmem>>, vector<256x128xf32>,
    %c0_i32_8 = arith.constant 0 : i32
    %9 = arith.cmpi eq, %arg2, %c0_i32_8 : i32
    %10 = arith.extui %9 : i1 to i32
    %c0_i32_9 = arith.constant 0 : i32
    %11 = arith.cmpi ne, %10, %c0_i32_9 : i32
    scf.if %11 {
      %c0_10 = arith.constant 0 : index
      %c0_11 = arith.constant 0 : index
      %12 = vector.load %arg7[%c0_10, %c0_11] : memref<256x128xf32, #tpu.memory_space<vmem>>, vector<256x128xf32>
      %c0_12 = arith.constant 0 : index
      %c0_13 = arith.constant 0 : index
      %13 = vector.load %arg5[%c0_12, %c0_13] : memref<1x128xf32, #tpu.memory_space<vmem>>, vector<1x128xf32>
      %14 = vector.broadcast %13 : vector<1x128xf32> to vector<256x128xf32>
      %15 = arith.addf %12, %14 : vector<256x128xf32>
      %cst_14 = arith.constant 0.000000e+00 : f32
      %16 = vector.broadcast %cst_14 : f32 to vector<256x128xf32>
      %17 = arith.maximumf %15, %16 : vector<256x128xf32>
      %c0_15 = arith.constant 0 : index
      %c0_16 = arith.constant 0 : index
      %18 = vector.load %arg6[%c0_15, %c0_16] : memref<256x128xf32, #tpu.memory_space<vmem>>, vector<256x128xf32>
      tpu.vector_store %arg6[%c0_15, %c0_16], %17 {strides = array<i32>} : memref<256x128xf32, #tpu.memory_space<vmem>>, vector<256x128xf32>,
    } else {
    }
    return
  }
  func.func @transform_0(%arg0: i32, %arg1: i32, %arg2: i32) -> (i32, i32) {
    %c0_i32 = arith.constant 0 : i32
    return %arg0, %arg2 : i32, i32
  }
  func.func @transform_1(%arg0: i32, %arg1: i32, %arg2: i32) -> (i32, i32) {
    %c0_i32 = arith.constant 0 : i32
    return %arg2, %arg1 : i32, i32
  }
  func.func @transform_2(%arg0: i32, %arg1: i32, %arg2: i32) -> (i32, i32) {
    %c0_i32 = arith.constant 0 : i32
    %c0_i32_0 = arith.constant 0 : i32
    return %c0_i32, %arg1 : i32, i32
  }
  func.func @transform_3(%arg0: i32, %arg1: i32, %arg2: i32) -> (i32, i32) {
    %c0_i32 = arith.constant 0 : i32
    return %arg0, %arg1 : i32, i32
  }
}

</mosaic_0001>

<bundles_post_ra>
// kernel: tpu_custom_call.1
= control target key start
LH: loop header
LB: loop body
LE: loop exit
PB: predicated region body
PF: predicated region fallthrough
CT: control target
= control target key end

     0   :  { %8 = vsyncpa [#allocation4], 0  ;;  %s1424_s0 = inlined_call_operand.vmem [shape: bf16[512,36], index: 0, kind: input, shape index: {}]   ;;  %s1425_s1 = inlined_call_operand.vmem [shape: bf16[36,128], index: 1, kind: input, shape index: {}]   ;;  %s1426_s2 = inlined_call_operand.vmem [shape: f32[1,128], index: 2, kind: input, shape index: {}]   ;;  %s1427_s3 = inlined_call_operand.hbm [shape: f32[512,128], index: 3, kind: output, shape index: {}]  }
   0x1   :  { %10 = vsyncpa [#allocation4 + $0x1], 0  ;;  %s1209_s12 = smov 0   ;;  %s1211_s13 = smov 0  }
   0x2   :  { %s1213_s14 = smov 0   ;;  %s1215_s15 = smov 0  }
   0x3   :  { %s1217_s16 = smov 0   ;;  %s1219_s17 = smov 0  }
   0x4 LB: > { %s918_s18 = sadd.s32 4294967295, %s1185_s17   ;;  %s919_s19 = sadd.s32 4294967294, %s1185_s17   ;;  %s1185_s17 = sphi %s1219_s17, %s16_s17   ;;  %s1181_s16 = sphi %s1217_s16, %s1434_s16   ;;  %s1177_s15 = sphi %s1215_s15, %s1433_s15   ;;  %s1173_s14 = sphi %s1213_s14, %s1432_s14   ;;  %s1169_s13 = sphi %s1211_s13, %s1431_s13   ;;  %s1165_s12 = sphi %s1209_s12, %s1430_s12  }
   0x5   : > { %s35_s20 = sadd.s32 1, %s1181_s16  ;;  %s126_s21 = sadd.s32 1, %s1173_s14 }
   0x6   : > { %p37_p0 = scmp.ge.s32.totalorder %s35_s20, 2  ;;  %p136_p1 = scmp.ne.s32.totalorder %s1173_s14, %s1169_s13 }
   0x7   : > { %p137_p2 = scmp.eq.s32.totalorder %s918_s18, 1  ;;  %p142_p3 = scmp.ne.s32.totalorder %s1169_s13, %s1165_s12 }
   0x8   : > { %s1436_s20 = smov (%p37_p0, %s35_s20), 0  ;;  %p143_p5 = scmp.eq.s32.totalorder %s919_s19, 1 }
   0x9   : > { %p1249_p4 = por %p137_p2, %p136_p1  ;;  %s121_s23 = ssub.s32 %s1181_s16, %s1436_s20 }
   0xa   : > { %p924_p6 = scmp.ge.s32.totalorder %s1185_s17, 1  ;;  %p124_p7 = scmp.eq.s32.totalorder %s121_s23, 0 }
   0xb   : > { %p1256_p8 = por %p143_p5, %p142_p3  ;;  %p191_p9 = scmp.lt.s32.totalorder %s1185_s17, 3 }
   0xc   : > { %s1262_s25 = scalar_select %p124_p7, %s1173_s14, %s126_s21  }
   0xd   : > { %p192_p10 = pnand %p924_p6, %p191_p9 }
   0xe   : > { %s926_s28 = sshll.u32 (!%p192_p10), %s1177_s15, 5  ;;  %s226_s10 = sand.u32 (!%p192_p10), 1, %s1169_s13  }
   0xf   : > { %195 = sbr.rel (%p192_p10) target bundleno = 235 (0xeb), region = 32  ;;  %p230_p11 = scmp.lt.s32.totalorder (!%p192_p10), %s926_s28, 63 }
  0x10   : > { %s925_s19 = sshll.u32 (!%p192_p10), %s226_s10, 8  ;;  %s1039_s23 = sshll.u32 (!%p192_p10), %s1177_s15, 8 }
  0x11   : > { %s1321_s21 = scalar_lea.vmem (!%p192_p10), [#allocation3], %s925_s19  ;;  %s794_s30 = scalar_lea.sflag (!%p192_p10), [#allocation4], %s226_s10 }
  0x12   : > { %s807_s29 = sshll.u32 (!%p192_p10), %s1321_s21, 4  ;;  %s1127_s8 = scalar_lea.hbm (!%p192_p10), %s1427_s3, 512  ;;  %s808_s29 = int_to_ptr.vmem [resolvable:$true] %s807_s29 }
  0x14   : > { %v356_v0 = vld [vmem:[%s1425_s1 + $0x10] sm:$0x3]  ;;  %vm501_vm0 = vcmask 1041408   ;;  %s1438_s28 = smov (!%p230_p11, %s926_s28), 63  ;;  %v1038_v4 = vld [vmem:[%s1425_s1 + $0x8] sm:$0xff]  ;;  %v1037_v5 = vld [vmem:[%s1425_s1] sm:$0xff] }
  0x15   : > { %v446_v1 = vunpack.c.l.b16 %v356_v0  ;;  %s927_s4 = sshll.u32 %s1438_s28, 2  ;;  %vm452_vm1 = vcmask 293888   ;;  %v1315_v22 = vld [vmem:[%s1426_s2] ss:$0 sm:$0xff]  ;;  %s806_s28 = scalar_lea.hbm %s1427_s3, %s1039_s23 }
  0x16   : > { %s1277_s9 = scalar_lea.vmem %s1424_s0, %s927_s4  ;;  %s809_s15 = sshll.u32 %s806_s28, 4  ;;  %s810_s15 = int_to_ptr.hbm [resolvable:$true] %s809_s15 }
  0x17   : > { %v449_v2 = vpack.c.b16 %v446_v1, %v446_v1  ;;  %v1021_v6 = vld [vmem:[%s1277_s9] sm:$0xff]  ;;  %v1022_v10 = vld [vmem:[%s1277_s9 + $0x8] sm:$0xff]  ;;  %v1023_v14 = vld [vmem:[%s1277_s9 + $0x10] sm:$0xff]  ;;  %s1121_s4 = sshra.s32 %s810_s15, 4  ;;  %s1122_s4 = int_to_ptr.hbm [resolvable:$true] %s1121_s4 }
  0x18   : > { %v1025_v7 = vld [vmem:[%s1277_s9 + $0x20] sm:$0xff]  ;;  %v1026_v11 = vld [vmem:[%s1277_s9 + $0x28] sm:$0xff]  ;;  %v1027_v15 = vld [vmem:[%s1277_s9 + $0x30] sm:$0xff]  ;;  %s1123_s5 = scalar_lea.hbm %s1122_s4, 256  ;;  %p1128_p1 = scmp.lt.s32.totalorder %s1122_s4, %s1427_s3 }
  0x19   : > { %v503_v3 = vsel %vm501_vm0, %v449_v2, 0  ;;  %v1029_v8 = vld [vmem:[%s1277_s9 + $0x40] sm:$0xff]  ;;  %v1030_v12 = vld [vmem:[%s1277_s9 + $0x48] sm:$0xff]  ;;  %v1031_v16 = vld [vmem:[%s1277_s9 + $0x50] sm:$0xff]  ;;  %p1124_p12 = scmp.ne.s32.totalorder %s1122_s4, %s1123_s5  ;;  %p1129_p2 = scmp.lt.s32.totalorder %s1127_s8, %s1123_s5 }
  0x1a   : > { %510 = vmatpush.bf16.msra.mxu0 %v503_v3  ;;  %1040 = vmatpush.bf16.msra.mxu1 %v503_v3  ;;  %v1033_v9 = vld [vmem:[%s1277_s9 + $0x60] sm:$0xff]  ;;  %v1034_v13 = vld [vmem:[%s1277_s9 + $0x68] sm:$0xff]  ;;  %v1035_v17 = vld [vmem:[%s1277_s9 + $0x70] sm:$0xff] }
  0x1b   : > { %1041 = vmatpush.bf16.msra.mxu2 %v503_v3  ;;  %1042 = vmatpush.bf16.msra.mxu3 %v503_v3  ;;  %v1024_v18 = vld [vmem:[%s1277_s9 + $0x18] sm:$0xff]  ;;  %p1125_p13 = pnand %p1124_p12, %p1249_p4  ;;  %p1130_p3 = por %p1129_p2, %p1128_p1 }
  0x1c   : > { %v1028_v19 = vld [vmem:[%s1277_s9 + $0x38] sm:$0xff] }
  0x1d   : > { %v1032_v20 = vld [vmem:[%s1277_s9 + $0x58] sm:$0xff]  ;;  %p1126_p0 = pneg %p1125_p13 }
  0x1e   : > { %511 = vmatpush.bf16.msra.mxu0 %v1038_v4  ;;  %1043 = vmatpush.bf16.msra.mxu1 %v1038_v4  ;;  %v1036_v21 = vld [vmem:[%s1277_s9 + $0x78] sm:$0xff] }
  0x1f   : > { %1044 = vmatpush.bf16.msra.mxu2 %v1038_v4  ;;  %1045 = vmatpush.bf16.msra.mxu3 %v1038_v4  ;;  %p1131_p5 = pnand %p1130_p3, %p1126_p0 }
  0x22   : > { %512 = vmatpush.bf16.msra.mxu0 %v1037_v5  ;;  %1046 = vmatpush.bf16.msra.mxu1 %v1037_v5 }
  0x23   : > { %1047 = vmatpush.bf16.msra.mxu2 %v1037_v5  ;;  %1048 = vmatpush.bf16.msra.mxu3 %v1037_v5 }
  0x25   : > { %1000 = vmatmul.msk.bf16.vlgmr.msra.gmra.mxu0 %vm452_vm1, %v1021_v6  ;;  %1004 = vmatmul.msk.bf16.vlgmr.msra.gmra.mxu1 %vm452_vm1, %v1025_v7 }
  0x26   : > { %1008 = vmatmul.msk.bf16.vlgmr.msra.gmra.mxu2 %vm452_vm1, %v1029_v8  ;;  %1012 = vmatmul.msk.bf16.vlgmr.msra.gmra.mxu3 %vm452_vm1, %v1033_v9 }
  0x35   : > { %1001 = vmatmul.msk.bf16.gmra.mxu0 %vm452_vm1, %v1022_v10  ;;  %1005 = vmatmul.msk.bf16.gmra.mxu1 %vm452_vm1, %v1026_v11 }
  0x36   : > { %1009 = vmatmul.msk.bf16.gmra.mxu2 %vm452_vm1, %v1030_v12  ;;  %1013 = vmatmul.msk.bf16.gmra.mxu3 %vm452_vm1, %v1034_v13 }
  0x45   : > { %1002 = vmatmul.msk.bf16.gmra.mxu0 %vm452_vm1, %v1023_v14  ;;  %1006 = vmatmul.msk.bf16.gmra.mxu1 %vm452_vm1, %v1027_v15 }
  0x46   : > { %1010 = vmatmul.msk.bf16.gmra.mxu2 %vm452_vm1, %v1031_v16  ;;  %1014 = vmatmul.msk.bf16.gmra.mxu3 %vm452_vm1, %v1035_v17 }
  0x55   : > { %1003 = vmatmul.msk.bf16.gmra.mxu0 %vm452_vm1, %v1024_v18  ;;  %1007 = vmatmul.msk.bf16.gmra.mxu1 %vm452_vm1, %v1028_v19 }
  0x56   : > { %1011 = vmatmul.msk.bf16.gmra.mxu2 %vm452_vm1, %v1032_v20  ;;  %1015 = vmatmul.msk.bf16.gmra.mxu3 %vm452_vm1, %v1036_v21 }
  0xa2   : > { %v514_v23 = vpop.f32.mrf.mxu0  ;;  %v534_v24 = vpop.f32.mrf.mxu1 }
  0xa3   : > { %v697_v25 = vadd.f32 %v1315_v22, %v514_v23  ;;  %v705_v26 = vadd.f32 %v1315_v22, %v534_v24 }
  0xa5   : > { %v729_v27 = vmax.f32 %v697_v25, 0.0  ;;  %v737_v28 = vmax.f32 %v705_v26, 0.0 }
  0xa7   : > { %761 = vst [vmem:[%s1321_s21] sm:$0xff] %v729_v27 }
  0xa8   : > { %769 = vst [vmem:[%s1321_s21 + $0x40] sm:$0xff] %v737_v28 }
  0xa9   : > { %v554_v29 = vpop.f32.mrf.mxu2  ;;  %v574_v30 = vpop.f32.mrf.mxu3 }
  0xaa   : > { %v713_v31 = vadd.f32 %v1315_v22, %v554_v29  ;;  %v721_v32 = vadd.f32 %v1315_v22, %v574_v30  ;;  %v516_v33 = vpop.f32.mrf.mxu0  ;;  %v536_v34 = vpop.f32.mrf.mxu1 }
  0xab   : > { %v698_v35 = vadd.f32 %v1315_v22, %v516_v33  ;;  %v706_v36 = vadd.f32 %v1315_v22, %v536_v34 }
  0xac   : > { %v745_v37 = vmax.f32 %v713_v31, 0.0  ;;  %v753_v38 = vmax.f32 %v721_v32, 0.0 }
  0xad   : > { %v730_v39 = vmax.f32 %v698_v35, 0.0  ;;  %v738_v40 = vmax.f32 %v706_v36, 0.0 }
  0xae   : > { %777 = vst [vmem:[%s1321_s21 + $0x80] sm:$0xff] %v745_v37 }
  0xaf   : > { %785 = vst [vmem:[%s1321_s21 + $0xc0] sm:$0xff] %v753_v38 }
  0xb0   : > { %762 = vst [vmem:[%s1321_s21 + $0x8] sm:$0xff] %v730_v39 }
  0xb1   : > { %770 = vst [vmem:[%s1321_s21 + $0x48] sm:$0xff] %v738_v40  ;;  %v556_v41 = vpop.f32.mrf.mxu2  ;;  %v576_v42 = vpop.f32.mrf.mxu3 }
  0xb2   : > { %v714_v43 = vadd.f32 %v1315_v22, %v556_v41  ;;  %v722_v44 = vadd.f32 %v1315_v22, %v576_v42  ;;  %v519_v45 = vpop.f32.mrf.mxu0  ;;  %v539_v46 = vpop.f32.mrf.mxu1 }
  0xb3   : > { %v699_v47 = vadd.f32 %v1315_v22, %v519_v45  ;;  %v707_v48 = vadd.f32 %v1315_v22, %v539_v46 }
  0xb4   : > { %v746_v49 = vmax.f32 %v714_v43, 0.0  ;;  %v754_v50 = vmax.f32 %v722_v44, 0.0 }
  0xb5   : > { %v731_v51 = vmax.f32 %v699_v47, 0.0  ;;  %v739_v52 = vmax.f32 %v707_v48, 0.0 }
  0xb6   : > { %778 = vst [vmem:[%s1321_s21 + $0x88] sm:$0xff] %v746_v49 }
  0xb7   : > { %786 = vst [vmem:[%s1321_s21 + $0xc8] sm:$0xff] %v754_v50 }
  0xb8   : > { %763 = vst [vmem:[%s1321_s21 + $0x10] sm:$0xff] %v731_v51 }
  0xb9   : > { %771 = vst [vmem:[%s1321_s21 + $0x50] sm:$0xff] %v739_v52  ;;  %v559_v53 = vpop.f32.mrf.mxu2  ;;  %v579_v54 = vpop.f32.mrf.mxu3 }
  0xba   : > { %v715_v55 = vadd.f32 %v1315_v22, %v559_v53  ;;  %v723_v56 = vadd.f32 %v1315_v22, %v579_v54  ;;  %v521_v57 = vpop.f32.mrf.mxu0  ;;  %v541_v58 = vpop.f32.mrf.mxu1 }
  0xbb   : > { %v700_v59 = vadd.f32 %v1315_v22, %v521_v57  ;;  %v708_v60 = vadd.f32 %v1315_v22, %v541_v58 }
  0xbc   : > { %v747_v61 = vmax.f32 %v715_v55, 0.0  ;;  %v755_v62 = vmax.f32 %v723_v56, 0.0 }
  0xbd   : > { %v732_v63 = vmax.f32 %v700_v59, 0.0  ;;  %v740_v0 = vmax.f32 %v708_v60, 0.0 }
  0xbe   : > { %779 = vst [vmem:[%s1321_s21 + $0x90] sm:$0xff] %v747_v61 }
  0xbf   : > { %787 = vst [vmem:[%s1321_s21 + $0xd0] sm:$0xff] %v755_v62 }
  0xc0   : > { %764 = vst [vmem:[%s1321_s21 + $0x18] sm:$0xff] %v732_v63 }
  0xc1   : > { %772 = vst [vmem:[%s1321_s21 + $0x58] sm:$0xff] %v740_v0  ;;  %v561_v1 = vpop.f32.mrf.mxu2  ;;  %v581_v2 = vpop.f32.mrf.mxu3 }
  0xc2   : > { %v716_v3 = vadd.f32 %v1315_v22, %v561_v1  ;;  %v724_v4 = vadd.f32 %v1315_v22, %v581_v2  ;;  %v524_v5 = vpop.f32.mrf.mxu0  ;;  %v544_v6 = vpop.f32.mrf.mxu1 }
  0xc3   : > { %v701_v7 = vadd.f32 %v1315_v22, %v524_v5  ;;  %v709_v8 = vadd.f32 %v1315_v22, %v544_v6 }
  0xc4   : > { %v748_v9 = vmax.f32 %v716_v3, 0.0  ;;  %v756_v10 = vmax.f32 %v724_v4, 0.0 }
  0xc5   : > { %v733_v11 = vmax.f32 %v701_v7, 0.0  ;;  %v741_v12 = vmax.f32 %v709_v8, 0.0 }
  0xc6   : > { %780 = vst [vmem:[%s1321_s21 + $0x98] sm:$0xff] %v748_v9 }
  0xc7   : > { %788 = vst [vmem:[%s1321_s21 + $0xd8] sm:$0xff] %v756_v10 }
  0xc8   : > { %765 = vst [vmem:[%s1321_s21 + $0x20] sm:$0xff] %v733_v11 }
  0xc9   : > { %773 = vst [vmem:[%s1321_s21 + $0x60] sm:$0xff] %v741_v12  ;;  %v564_v13 = vpop.f32.mrf.mxu2  ;;  %v584_v14 = vpop.f32.mrf.mxu3 }
  0xca   : > { %v717_v15 = vadd.f32 %v1315_v22, %v564_v13  ;;  %v725_v16 = vadd.f32 %v1315_v22, %v584_v14  ;;  %v526_v17 = vpop.f32.mrf.mxu0  ;;  %v546_v18 = vpop.f32.mrf.mxu1 }
  0xcb   : > { %v702_v19 = vadd.f32 %v1315_v22, %v526_v17  ;;  %v710_v20 = vadd.f32 %v1315_v22, %v546_v18 }
  0xcc   : > { %v749_v21 = vmax.f32 %v717_v15, 0.0  ;;  %v757_v23 = vmax.f32 %v725_v16, 0.0 }
  0xcd   : > { %v734_v24 = vmax.f32 %v702_v19, 0.0  ;;  %v742_v25 = vmax.f32 %v710_v20, 0.0 }
  0xce   : > { %781 = vst [vmem:[%s1321_s21 + $0xa0] sm:$0xff] %v749_v21 }
  0xcf   : > { %789 = vst [vmem:[%s1321_s21 + $0xe0] sm:$0xff] %v757_v23 }
  0xd0   : > { %766 = vst [vmem:[%s1321_s21 + $0x28] sm:$0xff] %v734_v24 }
  0xd1   : > { %774 = vst [vmem:[%s1321_s21 + $0x68] sm:$0xff] %v742_v25  ;;  %v566_v26 = vpop.f32.mrf.mxu2  ;;  %v586_v27 = vpop.f32.mrf.mxu3 }
  0xd2   : > { %v718_v28 = vadd.f32 %v1315_v22, %v566_v26  ;;  %v726_v29 = vadd.f32 %v1315_v22, %v586_v27  ;;  %v529_v30 = vpop.f32.mrf.mxu0  ;;  %v549_v31 = vpop.f32.mrf.mxu1 }
  0xd3   : > { %v703_v32 = vadd.f32 %v1315_v22, %v529_v30  ;;  %v711_v33 = vadd.f32 %v1315_v22, %v549_v31 }
  0xd4   : > { %v750_v34 = vmax.f32 %v718_v28, 0.0  ;;  %v758_v35 = vmax.f32 %v726_v29, 0.0 }
  0xd5   : > { %v735_v36 = vmax.f32 %v703_v32, 0.0  ;;  %v743_v37 = vmax.f32 %v711_v33, 0.0 }
  0xd6   : > { %782 = vst [vmem:[%s1321_s21 + $0xa8] sm:$0xff] %v750_v34 }
  0xd7   : > { %790 = vst [vmem:[%s1321_s21 + $0xe8] sm:$0xff] %v758_v35 }
  0xd8   : > { %767 = vst [vmem:[%s1321_s21 + $0x30] sm:$0xff] %v735_v36 }
  0xd9   : > { %775 = vst [vmem:[%s1321_s21 + $0x70] sm:$0xff] %v743_v37  ;;  %v569_v38 = vpop.f32.mrf.mxu2  ;;  %v589_v39 = vpop.f32.mrf.mxu3 }
  0xda   : > { %v719_v40 = vadd.f32 %v1315_v22, %v569_v38  ;;  %v727_v41 = vadd.f32 %v1315_v22, %v589_v39  ;;  %v531_v42 = vpop.f32.mrf.mxu0  ;;  %v551_v43 = vpop.f32.mrf.mxu1 }
  0xdb   : > { %v704_v44 = vadd.f32 %v1315_v22, %v531_v42  ;;  %v712_v45 = vadd.f32 %v1315_v22, %v551_v43 }
  0xdc   : > { %v751_v46 = vmax.f32 %v719_v40, 0.0  ;;  %v759_v47 = vmax.f32 %v727_v41, 0.0 }
  0xdd   : > { %v736_v48 = vmax.f32 %v704_v44, 0.0  ;;  %v744_v49 = vmax.f32 %v712_v45, 0.0 }
  0xde   : > { %783 = vst [vmem:[%s1321_s21 + $0xb0] sm:$0xff] %v751_v46 }
  0xdf   : > { %791 = vst [vmem:[%s1321_s21 + $0xf0] sm:$0xff] %v759_v47 }
  0xe0   : > { %768 = vst [vmem:[%s1321_s21 + $0x38] sm:$0xff] %v736_v48 }
  0xe1   : > { %776 = vst [vmem:[%s1321_s21 + $0x78] sm:$0xff] %v744_v49  ;;  %v571_v50 = vpop.f32.mrf.mxu2  ;;  %v591_v51 = vpop.f32.mrf.mxu3 }
  0xe2   : > { %v720_v52 = vadd.f32 %v1315_v22, %v571_v50  ;;  %v728_v53 = vadd.f32 %v1315_v22, %v591_v51 }
  0xe4   : > { %v752_v54 = vmax.f32 %v720_v52, 0.0  ;;  %v760_v55 = vmax.f32 %v728_v53, 0.0 }
  0xe6   : > { %784 = vst [vmem:[%s1321_s21 + $0xb8] sm:$0xff] %v752_v54 }
  0xe7   : > { %792 = vst [vmem:[%s1321_s21 + $0xf8] sm:$0xff] %v760_v55 }
  0xe8   : > { %1134 = shalt.err (!%p1131_p5)
}
  0xe9   : > { %s1187_s10 = smov 128   ;;  %s1188_s18 = smov 8  }
  0xea   : > { %1049 = dma.vmem_to_hbm [thread:$0]  (%p1249_p4), %s808_s29, 4096, %s810_s15, %s794_s30, %s1187_s10, %s1187_s10, %s1188_s18  }
  0xeb PF: > { %p1055_p6 = scmp.ge.s32.totalorder %s1185_s17, 2  ;;  %s824_s19 = sand.u32 1, %s1165_s12  }
  0xec   : > { %s825_s21 = scalar_lea.sflag [#allocation4], %s824_s19 }
  0xed   : > { %p1052_p7 = pnand %p1055_p6, %p1256_p8 }
  0xef   : > { %p1053_p9 = pneg %p1052_p7 }
  0xf1   : > { %1160 = dma.done.wait (%p1053_p9), %s825_s21, 4096  }
  0xf2   : > { %1162 = vsyncadd (%p1053_p9), %s825_s21, 4294963200  ;;  %s16_s17 = sadd.s32 1, %s1185_s17   ;;  %s1430_s12 = smov %s1169_s13 }
  0xf3   : > { %p13_p10 = scmp.ge.s32.totalorder %s16_s17, 4   ;;  %s1431_s13 = smov %s1173_s14 }
  0xf4   : > { %s1432_s14 = smov %s1262_s25  ;;  %s1433_s15 = smov %s1181_s16 }
  0xf5   : > { %s1434_s16 = smov %s1436_s20  ;;  %15 = sbr.rel (!%p13_p10) target bundleno = 4 (0x4), region = 81 }
  0xfa   :  { %831 = vsyncpa [#allocation4], 1 }
  0xfb   :  { %833 = vsyncpa [#allocation4 + $0x1], 1 }

</bundles_post_ra>
